<compile_context>
chip_gen: v7x
topology: tpu7x:2x2x1
jax: 0.10.0
libtpu: 0.0.40
codegen_flags: <defaults>
</compile_context>

<pallas_src>
import functools
import math

import jax
import jax.numpy as jnp
from jax import lax
from jax.experimental import pallas as pl
from jax.experimental.pallas import tpu as pltpu

_NEG_VALID = -1000000.0  # mask value used by d2l's masked_softmax
_NEG_PAD = -1e30         # kills wrapper padding columns even when vl-mask saturates


def _round_up(x, m):
    return (x + m - 1) // m * m


def _vmem_limit_bytes():
    """Generation-aware scoped-VMEM budget (~half of physical VMEM)."""
    cap = 0
    try:
        cap = int(pltpu.get_tpu_info().vmem_capacity_bytes)
    except Exception:
        cap = 0
    if cap <= 0:
        cap = 128 * 1024 * 1024
    return int(max(32 * 1024 * 1024, min(cap // 2, 96 * 1024 * 1024)))


def _flash_kernel(vl_ref, q_ref, k_ref, v_ref, o_ref,
                  m_sc, l_sc, acc_sc, *, scale, block_k, k_real, k_pad):
    """Output-only path. grid = (B, Q_tiles, K_tiles); online softmax.

    vl_ref : SMEM int32 (B,)        -- scalar-prefetched valid lengths
    q_ref  : VMEM (block_q, Dp)
    k_ref  : VMEM (block_k, Dp)
    v_ref  : VMEM (block_k, Vp)
    o_ref  : VMEM (block_q, Vp)
    """
    b = pl.program_id(0)
    kv = pl.program_id(2)
    vl = vl_ref[b]

    @pl.when(kv == 0)
    def _():
        m_sc[...] = jnp.full_like(m_sc, _NEG_PAD)
        l_sc[...] = jnp.zeros_like(l_sc)
        acc_sc[...] = jnp.zeros_like(acc_sc)

    # Skip K tiles that are fully masked by valid_lens (their softmax weight
    # is exactly 0: exp(-1e6 - m) underflows in f32).  vl == 0 falls back to
    # processing every tile, which reproduces masked_softmax's uniform
    # attention over an all -1e6 row.
    @pl.when(jnp.logical_or(kv * block_k < vl, vl <= 0))
    def _():
        # Fold 1/sqrt(d) into the (block_q, Dp) Q tile: ~block_k/Dp fewer
        # VALU multiplies than scaling the (block_q, block_k) scores.
        q = q_ref[...] * scale
        # scores = q @ k^T : contract last dims directly (no K transpose),
        # native-dtype MXU operands, f32 accumulation.
        s = lax.dot_general(q, k_ref[...],
                            (((1,), (1,)), ((), ())),
                            preferred_element_type=jnp.float32)  # (block_q, block_k)

        # Single (1, block_k) column mask; the fill value distinguishes
        # vl-masked real columns (-1e6, masked_softmax semantics) from
        # wrapper lane-padding columns (-1e30, exactly zero weight).
        col = kv * block_k + lax.broadcasted_iota(jnp.int32, (1, block_k), 1)
        if k_pad > k_real:
            fill = jnp.where(col < k_real, _NEG_VALID, _NEG_PAD).astype(jnp.float32)
        else:
            fill = _NEG_VALID
        s = jnp.where(col < vl, s, fill)

        m_prev = m_sc[...]
        m_new = jnp.maximum(m_prev, jnp.max(s, axis=-1, keepdims=True))
        alpha = jnp.exp(m_prev - m_new)
        p = jnp.exp(s - m_new)                                     # f32
        l_sc[...] = alpha * l_sc[...] + jnp.sum(p, axis=-1, keepdims=True)
        acc_sc[...] = alpha * acc_sc[...] + jnp.dot(
            p.astype(v_ref.dtype), v_ref[...], preferred_element_type=jnp.float32)
        m_sc[...] = m_new

    @pl.when(kv == pl.num_programs(2) - 1)
    def _():
        inv = pl.reciprocal(l_sc[...], approx=True)  # EUP slot, ~free
        o_ref[...] = (acc_sc[...] * inv).astype(o_ref.dtype)


def _attn_weights_kernel(vl_ref, q_ref, k_ref, v_ref, o_ref, w_ref,
                         *, scale, k_real, k_pad):
    """Output + attention-weights path. grid = (B, Q_tiles); full K per step."""
    b = pl.program_id(0)
    q = q_ref[...] * scale
    s = lax.dot_general(q, k_ref[...],
                        (((1,), (1,)), ((), ())),
                        preferred_element_type=jnp.float32)        # (block_q, Kp)

    col = lax.broadcasted_iota(jnp.int32, (1, s.shape[-1]), 1)
    if k_pad > k_real:
        fill = jnp.where(col < k_real, _NEG_VALID, _NEG_PAD).astype(jnp.float32)
    else:
        fill = _NEG_VALID
    s = jnp.where(col < vl_ref[b], s, fill)

    m = jnp.max(s, axis=-1, keepdims=True)
    e = jnp.exp(s - m)
    denom = jnp.sum(e, axis=-1, keepdims=True)
    w = e / denom   # exact normalization: returned weights sum to 1

    w_ref[...] = w.astype(w_ref.dtype)
    o_ref[...] = jnp.dot(w.astype(v_ref.dtype), v_ref[...],
                         preferred_element_type=jnp.float32).astype(o_ref.dtype)


def dot_product_attention(queries, keys, values, valid_lens=None, *,
                          return_weights=True, tq=512, tk=1024):
    """Pallas implementation of DotProductAttention.forward.

    Returns (output, attention_weights); attention_weights is None when
    return_weights=False (flash path, no O(Q*K) HBM writeback).
    """
    B, Q, D = queries.shape
    Bk, K, Dk = keys.shape
    Bv, Kv, V = values.shape
    assert B == Bk == Bv and D == Dk and K == Kv

    if valid_lens is None:
        valid_lens = jnp.full((B,), K, dtype=jnp.int32)
    else:
        valid_lens = valid_lens.astype(jnp.int32)
        assert valid_lens.shape == (B,), "only 1-D valid_lens (B,) supported"
        # TODO(synk): 2-D valid_lens (B, Q) variant not implemented.

    itemsize = jnp.dtype(queries.dtype).itemsize
    Dp = _round_up(D, 128)
    Vp = _round_up(V, 128)
    scale = 1.0 / math.sqrt(D)
    vmem_limit = _vmem_limit_bytes()

    def _pick_block_q(limit):
        bq = min(_round_up(max(limit, 16), 16), _round_up(Q, 16))
        qp = _round_up(Q, bq)
        # Keep >= 2 tiles on the 'parallel' grid axes so both v7x TensorCores
        # get work even at batch=1.
        if B * (qp // bq) < 2:
            bq2 = _round_up(max((Q + 1) // 2, 16), 16)
            if bq2 < bq:
                bq, qp = bq2, _round_up(Q, bq2)
        return bq, qp

    def _pad(x, s1, s2):
        p1, p2 = s1 - x.shape[1], s2 - x.shape[2]
        if p1 == 0 and p2 == 0:
            return x
        return jnp.pad(x, ((0, 0), (0, p1), (0, p2)))

    if not return_weights:
        # ---------------- flash path (output only) ----------------
        block_q, Qp = _pick_block_q(tq)
        block_k = min(_round_up(tk, 128), _round_up(K, 128))
        Kp = _round_up(K, block_k)
        n_kb = Kp // block_k

        q_p = _pad(queries, Qp, Dp)
        k_p = _pad(keys, Kp, Dp)
        v_p = _pad(values, Kp, Vp)

        def kv_index(b, qi, ki, vl):
            # Fully vl-masked tiles repeat the last useful block index so no
            # new K/V DMA is issued for pruned grid steps.  vl == 0 keeps the
            # identity mapping (kernel falls back to the full pass).
            vlb = vl[b]
            last = jnp.where(vlb > 0,
                             (jnp.maximum(vlb, 1) - 1) // block_k,
                             n_kb - 1)
            return (b, jnp.minimum(ki, last), 0)

        grid_spec = pltpu.PrefetchScalarGridSpec(
            num_scalar_prefetch=1,
            grid=(B, Qp // block_q, n_kb),
            in_specs=[
                pl.BlockSpec((None, block_q, Dp), lambda b, qi, ki, vl: (b, qi, 0)),
                pl.BlockSpec((None, block_k, Dp), kv_index),
                pl.BlockSpec((None, block_k, Vp), kv_index),
            ],
            out_specs=pl.BlockSpec((None, block_q, Vp),
                                   lambda b, qi, ki, vl: (b, qi, 0)),
            scratch_shapes=[
                pltpu.VMEM((block_q, 1), jnp.float32),   # running max
                pltpu.VMEM((block_q, 1), jnp.float32),   # running denom
                pltpu.VMEM((block_q, Vp), jnp.float32),  # f32 accumulator
            ],
        )
        out_p = pl.pallas_call(
            functools.partial(_flash_kernel, scale=scale, block_k=block_k,
                              k_real=K, k_pad=Kp),
            out_shape=jax.ShapeDtypeStruct((B, Qp, Vp), queries.dtype),
            grid_spec=grid_spec,
            compiler_params=pltpu.CompilerParams(
                dimension_semantics=("parallel", "parallel", "arbitrary"),
                vmem_limit_bytes=vmem_limit),
        )(valid_lens, q_p, k_p, v_p)
        out = out_p[:, :Q, :V] if (Qp != Q or Vp != V) else out_p
        return out, None

    # ---------------- weights path (output + attention weights) ----------------
    Kp = _round_up(K, 128)
    # Clamp block_q so double-buffered full-K K/V blocks + (block_q, Kp) f32
    # score temporaries + double-buffered (block_q, Kp) weights output block
    # fit the scoped-VMEM budget (matters on v7x's 64 MiB physical VMEM).
    fixed = 2 * Kp * (Dp + Vp) * itemsize + (2 << 20)
    per_row = (Kp * (2 * itemsize + 3 * 4)
               + 2 * Dp * itemsize
               + Vp * (2 * itemsize + 4))
    avail = max(vmem_limit - fixed, 2 << 20)
    max_bq = max(16, (int(avail // per_row) // 16) * 16)
    block_q, Qp = _pick_block_q(min(tq, max_bq))

    q_p = _pad(queries, Qp, Dp)
    k_p = _pad(keys, Kp, Dp)
    v_p = _pad(values, Kp, Vp)

    grid_spec = pltpu.PrefetchScalarGridSpec(
        num_scalar_prefetch=1,
        grid=(B, Qp // block_q),
        in_specs=[
            pl.BlockSpec((None, block_q, Dp), lambda b, qi, vl: (b, qi, 0)),
            pl.BlockSpec((None, Kp, Dp), lambda b, qi, vl: (b, 0, 0)),
            pl.BlockSpec((None, Kp, Vp), lambda b, qi, vl: (b, 0, 0)),
        ],
        out_specs=[
            pl.BlockSpec((None, block_q, Vp), lambda b, qi, vl: (b, qi, 0)),
            pl.BlockSpec((None, block_q, Kp), lambda b, qi, vl: (b, qi, 0)),
        ],
    )
    out_p, w_p = pl.pallas_call(
        functools.partial(_attn_weights_kernel, scale=scale, k_real=K, k_pad=Kp),
        out_shape=(
            jax.ShapeDtypeStruct((B, Qp, Vp), queries.dtype),
            jax.ShapeDtypeStruct((B, Qp, Kp), queries.dtype),  # weights in input dtype
        ),
        grid_spec=grid_spec,
        compiler_params=pltpu.CompilerParams(
            dimension_semantics=("parallel", "parallel"),
            vmem_limit_bytes=vmem_limit),
    )(valid_lens, q_p, k_p, v_p)
    out = out_p[:, :Q, :V] if (Qp != Q or Vp != V) else out_p
    w = w_p[:, :Q, :K] if (Qp != Q or Kp != K) else w_p
    return out, w


def _reference(queries, keys, values, valid_lens):
    """Pure-JAX reference mirroring the PyTorch module."""
    d = queries.shape[-1]
    scores = jnp.einsum("bqd,bkd->bqk", queries, keys) / math.sqrt(d)
    if valid_lens is not None:
        col = jnp.arange(scores.shape[-1])[None, None, :]
        mask = col < valid_lens[:, None, None]
        scores = jnp.where(mask, scores, _NEG_VALID)
    w = jax.nn.softmax(scores, axis=-1)
    return jnp.einsum("bqk,bkv->bqv", w, values), w


if __name__ == "__main__":
    # Small shapes consistent with the module: batch=2, seq=8, hidden=32
    B, Q, K, D, V = 2, 8, 8, 32, 32
    key = jax.random.PRNGKey(0)
    kq, kk, kv = jax.random.split(key, 3)
    queries = jax.random.normal(kq, (B, Q, D), dtype=jnp.float32)
    keys = jax.random.normal(kk, (B, K, D), dtype=jnp.float32)
    values = jax.random.normal(kv, (B, K, V), dtype=jnp.float32)
    valid_lens = jnp.array([3, 6], dtype=jnp.int32)

    # Path 1: output + attention weights (mirrors the module's stored weights).
    out, weights = dot_product_attention(queries, keys, values, valid_lens,
                                         return_weights=True)
    out = jax.block_until_ready(out)
    weights = jax.block_until_ready(weights)

    # Path 2: flash-style, output only.
    out_flash, _ = dot_product_attention(queries, keys, values, valid_lens,
                                         return_weights=False)
    out_flash = jax.block_until_ready(out_flash)

    # Path 3: no masking (valid_lens=None), output only.
    out_nomask, _ = dot_product_attention(queries, keys, values, None,
                                          return_weights=False)
    out_nomask = jax.block_until_ready(out_nomask)

    ref_out, ref_w = _reference(queries, keys, values, valid_lens)
    ref_out_nm, _ = _reference(queries, keys, values, None)

    # approx=True reciprocal (flash finalize) -> slightly relaxed tolerance.
    tol = dict(atol=2e-3, rtol=2e-3)
    assert jnp.allclose(out, ref_out, **tol), "output mismatch (weights path)"
    assert jnp.allclose(weights, ref_w, **tol), "weights mismatch"
    assert jnp.allclose(out_flash, ref_out, **tol), "output mismatch (flash path)"
    assert jnp.allclose(out_nomask, ref_out_nm, **tol), "output mismatch (no mask)"

    # Path 4: multi-K-tile flash path with tile pruning (incl. valid_len == 0).
    B2, Q2, K2 = 2, 16, 384
    kq2, kk2, kv2 = jax.random.split(jax.random.PRNGKey(1), 3)
    q2 = jax.random.normal(kq2, (B2, Q2, D), dtype=jnp.float32)
    k2 = jax.random.normal(kk2, (B2, K2, D), dtype=jnp.float32)
    v2 = jax.random.normal(kv2, (B2, K2, V), dtype=jnp.float32)
    vl2 = jnp.array([0, 200], dtype=jnp.int32)
    out2, _ = dot_product_attention(q2, k2, v2, vl2, return_weights=False,
                                    tq=16, tk=128)
    out2 = jax.block_until_ready(out2)
    ref_out2, _ = _reference(q2, k2, v2, vl2)
    assert jnp.allclose(out2, ref_out2, **tol), "output mismatch (pruned flash path)"

    print("KERNEL_OK")
</pallas_src>

<mosaic_0001>
module attributes {stable_mosaic.version = 11 : i64} {
  func.func @_attn_weights_kernel(%arg0: i32, %arg1: i32, %arg2: memref<2xi32, #tpu.memory_space<smem>>, %arg3: memref<1x16x128xf32, #tpu.memory_space<vmem>>, %arg4: memref<1x128x128xf32, #tpu.memory_space<vmem>>, %arg5: memref<1x128x128xf32, #tpu.memory_space<vmem>>, %arg6: memref<1x16x128xf32, #tpu.memory_space<vmem>>, %arg7: memref<1x16x128xf32, #tpu.memory_space<vmem>>) attributes {dimension_semantics = [#tpu.dimension_semantics<parallel>, #tpu.dimension_semantics<parallel>], iteration_bounds = array<i64: 2, 1>, scalar_prefetch = 1 : i64, scratch_operands = 0 : i64, tpu.core_type = #tpu.core_type<tc>, window_params = [{transform_indices = @transform_0, window_bounds = array<i64: 1, 16, 128>}, {transform_indices = @transform_1, window_bounds = array<i64: 1, 128, 128>}, {transform_indices = @transform_2, window_bounds = array<i64: 1, 128, 128>}, {transform_indices = @transform_3, window_bounds = array<i64: 1, 16, 128>}, {transform_indices = @transform_4, window_bounds = array<i64: 1, 16, 128>}]} {
    %c0 = arith.constant 0 : index
    %c0_0 = arith.constant 0 : index
    %c0_1 = arith.constant 0 : index
    %0 = vector.load %arg3[%c0, %c0_0, %c0_1] : memref<1x16x128xf32, #tpu.memory_space<vmem>>, vector<1x16x128xf32>
    %1 = vector.shape_cast %0 : vector<1x16x128xf32> to vector<16x128xf32>
    %cst = arith.constant 0.176776692 : f32
    %2 = vector.broadcast %cst : f32 to vector<16x128xf32>
    %3 = arith.mulf %1, %2 : vector<16x128xf32>
    %c0_2 = arith.constant 0 : index
    %c0_3 = arith.constant 0 : index
    %c0_4 = arith.constant 0 : index
    %4 = vector.load %arg4[%c0_2, %c0_3, %c0_4] : memref<1x128x128xf32, #tpu.memory_space<vmem>>, vector<1x128x128xf32>
    %5 = vector.shape_cast %4 : vector<1x128x128xf32> to vector<128x128xf32>
    %cst_5 = arith.constant dense<0.000000e+00> : vector<16x128xf32>
    %6 = tpu.matmul %3, %5, %cst_5 {dimension_numbers = #tpu.dot_dimension_numbers<[1], [1], [0], [0], [0, 0, 1, 0], [], []>} : vector<16x128xf32>, vector<128x128xf32>, vector<16x128xf32> -> vector<16x128xf32>
    %7 = tpu.iota {dimensions = array<i32: 1>} : vector<1x128xi32>
    %c8_i32 = arith.constant 8 : i32
    %8 = vector.broadcast %c8_i32 : i32 to vector<1x128xi32>
    %9 = arith.cmpi slt, %7, %8 : vector<1x128xi32>
    %cst_6 = arith.constant -1.000000e+06 : f32
    %cst_7 = arith.constant -1.000000e+30 : f32
    %10 = vector.broadcast %cst_6 : f32 to vector<1x128xf32>
    %11 = vector.broadcast %cst_7 : f32 to vector<1x128xf32>
    %12 = arith.select %9, %10, %11 : vector<1x128xi1>, vector<1x128xf32>
    %13 = arith.index_cast %arg0 : i32 to index
    %14 = memref.load %arg2[%13] : memref<2xi32, #tpu.memory_space<smem>>
    %15 = vector.broadcast %14 : i32 to vector<1x128xi32>
    %16 = arith.cmpi slt, %7, %15 : vector<1x128xi32>
    %17 = vector.shape_cast %16 : vector<1x128xi1> to vector<1x128xi1>
    %18 = vector.broadcast %17 : vector<1x128xi1> to vector<16x128xi1>
    %19 = vector.shape_cast %12 : vector<1x128xf32> to vector<1x128xf32>
    %20 = vector.broadcast %19 : vector<1x128xf32> to vector<16x128xf32>
    %21 = arith.select %18, %6, %20 : vector<16x128xi1>, vector<16x128xf32>
    %cst_8 = arith.constant dense<0xFF800000> : vector<16xf32>
    %22 = vector.multi_reduction <maximumf>, %21, %cst_8 [1] : vector<16x128xf32> to vector<16xf32>
    %23 = vector.shape_cast %22 : vector<16xf32> to vector<16x1xf32>
    %24 = vector.broadcast %23 : vector<16x1xf32> to vector<16x128xf32>
    %25 = arith.subf %21, %24 : vector<16x128xf32>
    %26 = math.exp %25 : vector<16x128xf32>
    %cst_9 = arith.constant dense<0.000000e+00> : vector<16xf32>
    %27 = vector.multi_reduction <add>, %26, %cst_9 [1] : vector<16x128xf32> to vector<16xf32>
    %28 = vector.shape_cast %27 : vector<16xf32> to vector<16x1xf32>
    %29 = vector.broadcast %28 : vector<16x1xf32> to vector<16x128xf32>
    %30 = arith.divf %26, %29 : vector<16x128xf32>
    %c0_10 = arith.constant 0 : index
    %c0_11 = arith.constant 0 : index
    %c0_12 = arith.constant 0 : index
    %31 = vector.load %arg7[%c0_10, %c0_11, %c0_12] : memref<1x16x128xf32, #tpu.memory_space<vmem>>, vector<1x16x128xf32>
    %32 = vector.shape_cast %31 : vector<1x16x128xf32> to vector<16x128xf32>
    %33 = vector.shape_cast %30 : vector<16x128xf32> to vector<1x16x128xf32>
    tpu.vector_store %arg7[%c0_10, %c0_11, %c0_12], %33 {strides = array<i32>} : memref<1x16x128xf32, #tpu.memory_space<vmem>>, vector<1x16x128xf32>,
    %c0_13 = arith.constant 0 : index
    %c0_14 = arith.constant 0 : index
    %c0_15 = arith.constant 0 : index
    %34 = vector.load %arg5[%c0_13, %c0_14, %c0_15] : memref<1x128x128xf32, #tpu.memory_space<vmem>>, vector<1x128x128xf32>
    %35 = vector.shape_cast %34 : vector<1x128x128xf32> to vector<128x128xf32>
    %cst_16 = arith.constant dense<0.000000e+00> : vector<16x128xf32>
    %36 = tpu.matmul %30, %35, %cst_16 {dimension_numbers = #tpu.dot_dimension_numbers<[1], [0], [0], [1], [0, 0, 1, 1], [], []>} : vector<16x128xf32>, vector<128x128xf32>, vector<16x128xf32> -> vector<16x128xf32>
    %c0_17 = arith.constant 0 : index
    %c0_18 = arith.constant 0 : index
    %c0_19 = arith.constant 0 : index
    %37 = vector.load %arg6[%c0_17, %c0_18, %c0_19] : memref<1x16x128xf32, #tpu.memory_space<vmem>>, vector<1x16x128xf32>
    %38 = vector.shape_cast %37 : vector<1x16x128xf32> to vector<16x128xf32>
    %39 = vector.shape_cast %36 : vector<16x128xf32> to vector<1x16x128xf32>
    tpu.vector_store %arg6[%c0_17, %c0_18, %c0_19], %39 {strides = array<i32>} : memref<1x16x128xf32, #tpu.memory_space<vmem>>, vector<1x16x128xf32>,
    return
  }
  func.func @transform_0(%arg0: i32, %arg1: i32, %arg2: memref<2xi32, #tpu.memory_space<smem>>) -> (i32, i32, i32) {
    %c0_i32 = arith.constant 0 : i32
    %c0_i32_0 = arith.constant 0 : i32
    return %arg0, %arg1, %c0_i32 : i32, i32, i32
  }
  func.func @transform_1(%arg0: i32, %arg1: i32, %arg2: memref<2xi32, #tpu.memory_space<smem>>) -> (i32, i32, i32) {
    %c0_i32 = arith.constant 0 : i32
    %c0_i32_0 = arith.constant 0 : i32
    %c0_i32_1 = arith.constant 0 : i32
    return %arg0, %c0_i32, %c0_i32_0 : i32, i32, i32
  }
  func.func @transform_2(%arg0: i32, %arg1: i32, %arg2: memref<2xi32, #tpu.memory_space<smem>>) -> (i32, i32, i32) {
    %c0_i32 = arith.constant 0 : i32
    %c0_i32_0 = arith.constant 0 : i32
    %c0_i32_1 = arith.constant 0 : i32
    return %arg0, %c0_i32, %c0_i32_0 : i32, i32, i32
  }
  func.func @transform_3(%arg0: i32, %arg1: i32, %arg2: memref<2xi32, #tpu.memory_space<smem>>) -> (i32, i32, i32) {
    %c0_i32 = arith.constant 0 : i32
    %c0_i32_0 = arith.constant 0 : i32
    return %arg0, %arg1, %c0_i32 : i32, i32, i32
  }
  func.func @transform_4(%arg0: i32, %arg1: i32, %arg2: memref<2xi32, #tpu.memory_space<smem>>) -> (i32, i32, i32) {
    %c0_i32 = arith.constant 0 : i32
    %c0_i32_0 = arith.constant 0 : i32
    return %arg0, %arg1, %c0_i32 : i32, i32, i32
  }
}

</mosaic_0001>

<bundles_post_ra>
// kernel: tpu_custom_call.1
= control target key start
LH: loop header
LB: loop body
LE: loop exit
PB: predicated region body
PF: predicated region fallthrough
CT: control target
= control target key end

     0   :  { %s1688_s0 = inlined_call_operand.hbm [shape: s32[2], index: 0, kind: input, shape index: {}]   ;;  %s1689_s1 = inlined_call_operand.hbm [shape: f32[2,16,128], index: 1, kind: input, shape index: {}]   ;;  %s1690_s2 = inlined_call_operand.hbm [shape: f32[2,128,128], index: 2, kind: input, shape index: {}]   ;;  %s1691_s3 = inlined_call_operand.hbm [shape: f32[2,128,128], index: 3, kind: input, shape index: {}]   ;;  %s1692_s4 = inlined_call_operand.hbm [shape: f32[2,16,128], index: 4, kind: output, shape index: {0}]   ;;  %s1693_s5 = inlined_call_operand.hbm [shape: f32[2,16,128], index: 5, kind: output, shape index: {1}]  }
   0x1   :  { %1702 = sst [smem:[#allocation22_spill]] %s1690_s2  ;;  %s1048_s20 = scalar_lea.hbm %s1688_s0, 16 }
   0x2   :  { %p1049_p0 = scmp.ne.s32.totalorder %s1688_s0, %s1048_s20  ;;  %p1052_p1 = scmp.lt.u32.totalorder %s1048_s20, %s1688_s0 }
   0x4   :  { %p1054_p2 = pnand %p1052_p1, %p1049_p0 }
   0x6   :  { %1057 = shalt.err (!%p1054_p2)  }
   0x7   :  { %s1270_s25 = smov [#allocation3]  }
   0x8   :  { %12 = dma.hbm_to_smem %s1688_s0, 16, %s1270_s25, [#allocation2] }
   0x9   :  { %1228 = dma.done.wait [#allocation2], 16 }
   0xa   :  { %1229 = vsyncadd [#allocation2], 4294967280 }
   0xb   :  { %14 = sfence }
   0xc   :  { %15 = vsyncpa [#allocation5], 0 }
   0xd   :  { %17 = vsyncpa [#allocation5 + $0x1], 0 }
   0xe   :  { %18 = vsyncpa [#allocation8], 0 }
   0xf   :  { %20 = vsyncpa [#allocation8 + $0x1], 0 }
  0x10   :  { %21 = vsyncpa [#allocation6], 0 }
  0x11   :  { %23 = vsyncpa [#allocation6 + $0x1], 0 }
  0x12   :  { %24 = vsyncpa [#allocation12], 0 }
  0x13   :  { %26 = vsyncpa [#allocation12 + $0x1], 0  ;;  %s1323_s28 = smov 0   ;;  %s1325_s29 = smov 0  }
  0x14   :  { %s1327_s30 = smov 0   ;;  %s1329_s6 = smov 0  }
  0x15   :  { %s1331_s0 = smov 0   ;;  %s1333_s7 = smov 0  }
  0x16 LB: > { %1703 = sst [smem:[#allocation18_spill]] %s1256_s30  ;;  %s1354_s8 = sadd.s32 4294967295, %s1268_s7   ;;  %s1268_s7 = sphi %s1333_s7, %s32_s7   ;;  %s1264_s0 = sphi %s1331_s0, %s1729_s0   ;;  %s1260_s6 = sphi %s1329_s6, %s1728_s6   ;;  %s1256_s30 = sphi %s1327_s30, %s1724_s30   ;;  %s1252_s29 = sphi %s1325_s29, %s1727_s29   ;;  %s1248_s28 = sphi %s1323_s28, %s1726_s28  }
  0x17   : > { %s756_s9 = sadd.s32 4294967294, %s1268_s7   ;;  %s44_s10 = sadd.s32 1, %s1264_s0 }
  0x18   : > { %s53_s11 = sadd.s32 1, %s1256_s30  ;;  %p46_p3 = scmp.ge.s32.totalorder %s44_s10, 2 }
  0x19   : > { %p60_p4 = scmp.ne.s32.totalorder %s1256_s30, %s1252_s29  ;;  %p61_p5 = scmp.eq.s32.totalorder %s1268_s7, 0 }
  0x1a   : > { %p66_p6 = scmp.ne.s32.totalorder %s1252_s29, %s1248_s28  ;;  %s1731_s10 = smov (%p46_p3, %s44_s10), 0 }
  0x1b   : > { %1704 = sst [smem:[#allocation19_spill]] %s1731_s10  ;;  %p1366_p7 = por %p61_p5, %p60_p4 }
  0x1c   : > { %p67_p8 = scmp.eq.s32.totalorder %s1354_s8, 0  ;;  %s48_s13 = ssub.s32 %s1264_s0, %s1731_s10 }
  0x1d   : > { %p144_p9 = scmp.eq.s32.totalorder %s1354_s8, 1  ;;  %p51_p10 = scmp.eq.s32.totalorder %s48_s13, 0 }
  0x1e   : > { %p1374_p11 = por %p67_p8, %p66_p6  ;;  %p150_p13 = scmp.eq.s32.totalorder %s756_s9, 1 }
  0x1f   : > { %p1378_p12 = por %p144_p9, %p60_p4  ;;  %p984_p2 = scmp.lt.s32.totalorder %s1268_s7, 2 }
  0x20   : > { %s1706_s14 = scalar_select %p1374_p11, 1, 0 }
  0x21   : > { %s1707_s15 = scalar_select %p1378_p12, 1, 0 }
  0x22   : > { %s1383_s16 = scalar_select %p51_p10, %s1256_s30, %s53_s11  }
  0x23   : > { %p1385_p0 = por %p150_p13, %p66_p6  ;;  %s1392_s18 = sand.u32 1, %s1256_s30  }
  0x24   : > { %1708 = sst [smem:[#allocation20_spill]] %s1383_s16  ;;  %p1396_p3 = pnand %p984_p2, %p1366_p7 }
  0x25   : > { %s1709_s17 = scalar_select %p1385_p0, 1, 0 }
  0x26   : > { %s221_s20 = sand.u32 1, %s1268_s7   ;;  %s1694_s21 = sshll.u32 %s1392_s18, 7 }
  0x27   : > { %1710 = sst [smem:[#allocation21_spill]] %s1709_s17  ;;  %s783_s22 = sshll.u32 %s1264_s0, 11 }
  0x28   : > { %s225_s23 = scalar_lea.vmem [#allocation7], %s1694_s21  ;;  %s1712_s2 = sld [smem:[#allocation22_spill]] }
  0x29   : > { %s232_s24 = sshll.u32 %s225_s23, 4  ;;  %s1414_s9 = scalar_lea.sflag [#allocation8], %s221_s20  ;;  %s1412_s24 = int_to_ptr.vmem [resolvable:$true] %s232_s24 }
  0x2a   : > { %p1420_p5 = pneg %p1396_p3 }
  0x2e   : > { %s1410_s27 = scalar_lea.hbm %s1712_s2, %s783_s22  ;;  %s1063_s25 = scalar_lea.hbm %s1712_s2, 4096 }
  0x2f   : > { %s1058_s11 = scalar_lea.hbm %s1410_s27, 2048  ;;  %p1064_p8 = scmp.lt.u32.totalorder %s1410_s27, %s1712_s2 }
  0x30   : > { %p1059_p4 = scmp.ne.s32.totalorder %s1410_s27, %s1058_s11  ;;  %p1065_p9 = scmp.lt.u32.totalorder %s1063_s25, %s1058_s11 }
  0x31   : > { %p1067_p13 = scmp.lt.u32.totalorder %s1058_s11, %s1410_s27 }
  0x32   : > { %p1061_p6 = pnand %p1420_p5, %p1059_p4  ;;  %p1066_p10 = por %p1065_p9, %p1064_p8 }
  0x34   : > { %p1062_p7 = pneg %p1061_p6  ;;  %p1068_p2 = por %p1067_p13, %p1066_p10 }
  0x36   : > { %p1069_p1 = pnand %p1068_p2, %p1062_p7 }
  0x38   : > { %1072 = shalt.err (!%p1069_p1)
}
  0x39   : > { %s1073_s20 = scalar_lea.vmem %s1412_s24, 2048  ;;  %s1271_s13 = smov [#allocation7]  }
  0x3a   : > { %p1074_p4 = scmp.ne.s32.totalorder %s1412_s24, %s1073_s20  ;;  %s1078_s23 = sshll.u32 %s1271_s13, 4  ;;  %s1079_s23 = int_to_ptr.vmem [resolvable:$false] %s1078_s23 }
  0x3b   : > { %s1080_s21 = scalar_lea.vmem %s1079_s23, 4096  ;;  %p1081_p12 = scmp.lt.s32.totalorder %s1412_s24, %s1079_s23 }
  0x3c   : > { %p1076_p6 = pnand %p1074_p4, %p1420_p5  ;;  %p1082_p11 = scmp.lt.s32.totalorder %s1080_s21, %s1073_s20 }
  0x3e   : > { %p1077_p0 = pneg %p1076_p6  ;;  %p1083_p8 = por %p1082_p11, %p1081_p12 }
  0x40   : > { %p1084_p9 = pnand %p1083_p8, %p1077_p0 }
  0x42   : > { %1087 = shalt.err (!%p1084_p9)
}
  0x43   : > { %s1700_s11 = smov 128   ;;  %s1273_s25 = smov 8  }
  0x44   : > { %973 = dma.hbm_to_vmem [thread:$0]  (!%p1396_p3), %s1410_s27, 2048, %s1412_s24, %s1414_s9, %s1700_s11, %s1700_s11, %s1273_s25  }
  0x45   : > { %s1452_s13 = scalar_lea.hbm %s1691_s3, %s783_s22  ;;  %p768_p11 = scmp.ge.s32.totalorder %s1268_s7, 1 }
  0x46   : > { %s1714_s23 = sshll.u32 %s1392_s18, 7  ;;  %p261_p12 = scmp.lt.s32.totalorder %s1268_s7, 3 }
  0x47   : > { %s246_s21 = scalar_lea.vmem [#allocation9], %s1714_s23  ;;  %s759_s16 = sshll.u32 %s1392_s18, 4 }
  0x48   : > { %s253_s2 = sshll.u32 %s246_s21, 4  ;;  %p1458_p0 = pnand %p768_p11, %p261_p12  ;;  %s1469_s2 = int_to_ptr.vmem [resolvable:$true] %s253_s2 }
  0x49   : > { %s782_s30 = sshll.u32 %s1264_s0, 8  ;;  %s202_s22 = scalar_lea.vmem [#allocation4], %s759_s16 }
  0x4a   : > { %s1715_s10 = scalar_select %p1458_p0, 1, 0 }
  0x4b   : > { %s1467_s27 = scalar_lea.hbm %s1689_s1, %s782_s30  ;;  %s211_s26 = sshll.u32 %s202_s22, 4  ;;  %s1471_s26 = int_to_ptr.vmem [resolvable:$true] %s211_s26 }
  0x4c   : > { %s199_s20 = scalar_lea.sflag [#allocation5], %s1392_s18  ;;  %s1088_s23 = scalar_lea.hbm %s1467_s27, 256 }
  0x4d   : > { %p1089_p1 = scmp.ne.s32.totalorder %s1467_s27, %s1088_s23  ;;  %s1093_s30 = scalar_lea.hbm %s1689_s1, 512 }
  0x4e   : > { %p1094_p13 = scmp.lt.u32.totalorder %s1467_s27, %s1689_s1  ;;  %p1095_p2 = scmp.lt.u32.totalorder %s1093_s30, %s1088_s23 }
  0x4f   : > { %p1091_p7 = pnand %p1089_p1, %p1420_p5  ;;  %p1097_p6 = scmp.lt.u32.totalorder %s1088_s23, %s1467_s27 }
  0x50   : > { %p1096_p4 = por %p1095_p2, %p1094_p13 }
  0x51   : > { %p1092_p10 = pneg %p1091_p7 }
  0x52   : > { %p1098_p8 = por %p1097_p6, %p1096_p4 }
  0x54   : > { %p1099_p9 = pnand %p1098_p8, %p1092_p10 }
  0x56   : > { %1102 = shalt.err (!%p1099_p9)
}
  0x57   : > { %s1103_s16 = scalar_lea.vmem %s1471_s26, 256  ;;  %s1274_s22 = smov [#allocation4]  }
  0x58   : > { %p1104_p11 = scmp.ne.s32.totalorder %s1471_s26, %s1103_s16  ;;  %s1108_s21 = sshll.u32 %s1274_s22, 4  ;;  %s1109_s21 = int_to_ptr.vmem [resolvable:$false] %s1108_s21 }
  0x59   : > { %s1110_s11 = scalar_lea.vmem %s1109_s21, 512  ;;  %p1111_p7 = scmp.lt.s32.totalorder %s1471_s26, %s1109_s21 }
  0x5a   : > { %p1106_p12 = pnand %p1104_p11, %p1420_p5  ;;  %p1112_p0 = scmp.lt.s32.totalorder %s1110_s11, %s1103_s16 }
  0x5c   : > { %p1107_p1 = pneg %p1106_p12  ;;  %p1113_p13 = por %p1112_p0, %p1111_p7 }
  0x5e   : > { %p1114_p2 = pnand %p1113_p13, %p1107_p1 }
  0x60   : > { %1117 = shalt.err (!%p1114_p2)
}
  0x61   : > { %s1716_s23 = smov 128   ;;  %s1118_s17 = scalar_lea.hbm %s1452_s13, 2048 }
  0x62   : > { %970 = dma.hbm_to_vmem [thread:$0]  (!%p1396_p3), %s1467_s27, 256, %s1471_s26, %s199_s20, %s1716_s23, %s1716_s23, %s1273_s25  }
  0x63   : > { %p1119_p10 = scmp.ne.s32.totalorder %s1452_s13, %s1118_s17  ;;  %s1123_s16 = scalar_lea.hbm %s1691_s3, 4096 }
  0x64   : > { %p1124_p6 = scmp.lt.u32.totalorder %s1452_s13, %s1691_s3  ;;  %p1125_p8 = scmp.lt.u32.totalorder %s1123_s16, %s1118_s17 }
  0x65   : > { %p1121_p0 = pnand %p1119_p10, %p1420_p5  ;;  %p1127_p11 = scmp.lt.u32.totalorder %s1118_s17, %s1452_s13 }
  0x66   : > { %p1126_p9 = por %p1125_p8, %p1124_p6 }
  0x67   : > { %p1122_p4 = pneg %p1121_p0 }
  0x68   : > { %p1128_p12 = por %p1127_p11, %p1126_p9 }
  0x6a   : > { %p1129_p1 = pnand %p1128_p12, %p1122_p4 }
  0x6c   : > { %1132 = shalt.err (!%p1129_p1)
}
  0x6d   : > { %s1133_s18 = scalar_lea.vmem %s1469_s2, 2048  ;;  %s1275_s27 = smov [#allocation9]  }
  0x6e   : > { %p1134_p7 = scmp.ne.s32.totalorder %s1469_s2, %s1133_s18  ;;  %s1138_s26 = sshll.u32 %s1275_s27, 4  ;;  %s1139_s26 = int_to_ptr.vmem [resolvable:$false] %s1138_s26 }
  0x6f   : > { %s1140_s20 = scalar_lea.vmem %s1139_s26, 4096  ;;  %p1141_p10 = scmp.lt.s32.totalorder %s1469_s2, %s1139_s26 }
  0x70   : > { %p1136_p13 = pnand %p1134_p7, %p1420_p5  ;;  %p1142_p0 = scmp.lt.s32.totalorder %s1140_s20, %s1133_s18 }
  0x72   : > { %p1137_p2 = pneg %p1136_p13  ;;  %p1143_p6 = por %p1142_p0, %p1141_p10 }
  0x74   : > { %p1144_p8 = pnand %p1143_p6, %p1137_p2 }
  0x76   : > { %1147 = shalt.err (!%p1144_p8)
}
  0x77   : > { %976 = dma.hbm_to_vmem [thread:$0]  (!%p1396_p3), %s1452_s13, 2048, %s1469_s2, %s1414_s9, %s1716_s23, %s1716_s23, %s1273_s25  }
  0x78   : > { %p1717_p5 = scmp.ne.s32.totalorder %s1715_s10, 0 }
  0x79   : > { %s1528_s12 = sand.u32 (!%p1717_p5), 1, %s1252_s29   ;;  %p1718_p4 = scmp.ne.s32.totalorder (!%p1717_p5), %s1706_s14, 0 }
  0x7a   : > { %265 = sbr.rel (%p1717_p5) target bundleno = 957 (0x3bd), region = 32  ;;  %s1531_s11 = sshll.u32 (!%p1717_p5), %s1528_s12, 4 }
  0x7b   : > { %s268_s19 = scalar_lea.sflag (!%p1717_p5), [#allocation5], %s1528_s12  ;;  %s271_s17 = scalar_lea.vmem (!%p1717_p5), [#allocation4], %s1531_s11 }
  0x81   : > { %1231 = dma.done.wait (%p1718_p4), %s268_s19, 256  }
  0x82   : > { %1233 = vsyncadd (%p1718_p4), %s268_s19, 4294967040  ;;  %s276_s2 = sand.u32 1, %s1354_s8   ;;  %s770_s10 = sshll.u32 %s1528_s12, 7 }
  0x83   : > { %s277_s9 = scalar_lea.sflag [#allocation8], %s276_s2  ;;  %s1543_s25 = scalar_lea.vmem [#allocation7], %s770_s10 }
  0x84   : > { %1235 = dma.done.wait (%p1718_p4), %s277_s9, 4096  }
  0x85   : > { %1237 = vsyncadd (%p1718_p4), %s277_s9, 4294963200  ;;  %v336_v0 = vld [vmem:[%s1543_s25] sm:$0xff]  ;;  %v337_v1 = vld [vmem:[%s1543_s25 + $0x8] sm:$0xff]  ;;  %v427_v28 = vlaneseq  ;;  %s431_s8 = sld [smem:[#allocation3 + %s1260_s6]]  ;;  %v1276_v31 = vmov -1e+30  }
  0x86   : > { %v338_v2 = vld [vmem:[%s1543_s25 + $0x10] sm:$0xff]  ;;  %v893_v3 = vpack.c.bf16 %v337_v1, %v336_v0  ;;  %v339_v4 = vld [vmem:[%s1543_s25 + $0x18] sm:$0xff]  ;;  %v340_v7 = vld [vmem:[%s1543_s25 + $0x20] sm:$0xff]  ;;  %s1572_s14 = scalar_lea.vmem [#allocation9], %s770_s10  ;;  %s328_s13 = scalar_lea.vmem [#allocation11], %s1531_s11 }
  0x87   : > { %v897_v5 = vpack.c.bf16 %v339_v4, %v338_v2  ;;  %v332_v6 = vld [vmem:[%s271_s17] sm:$0xff]  ;;  %v341_v8 = vld [vmem:[%s1543_s25 + $0x28] sm:$0xff]  ;;  %v343_v12 = vld [vmem:[%s1543_s25 + $0x38] sm:$0xff]  ;;  %v428_v29 = vand.u32 127, %v427_v28  ;;  %s590_s23 = sshll.u32 %s328_s13, 4  ;;  %s785_s30 = sshll.u32 %s1260_s6, 8  ;;  %s1592_s23 = int_to_ptr.vmem [resolvable:$true] %s590_s23 }
  0x88   : > { %894 = vmatprep.subr.bf16.mxu0 %v893_v3  ;;  %v334_v9 = vmul.f32 0.17677669, %v332_v6  ;;  %v901_v10 = vpack.c.bf16 %v341_v8, %v340_v7  ;;  %v342_v11 = vld [vmem:[%s1543_s25 + $0x30] sm:$0xff]  ;;  %v344_v14 = vld [vmem:[%s1543_s25 + $0x40] sm:$0xff]  ;;  %v345_v15 = vld [vmem:[%s1543_s25 + $0x48] sm:$0xff]  ;;  %s1599_s22 = scalar_lea.hbm %s1693_s5, %s785_s30  ;;  %s557_s21 = scalar_lea.sflag [#allocation12], %s1528_s12 }
  0x89   : > { %896 = vmatpush3.bf16.xpose.msra.mxu0 %v893_v3  ;;  %v905_v13 = vpack.c.bf16 %v343_v12, %v342_v11  ;;  %v909_v16 = vpack.c.bf16 %v345_v15, %v344_v14  ;;  %v346_v17 = vld [vmem:[%s1543_s25 + $0x50] sm:$0xff]  ;;  %v347_v18 = vld [vmem:[%s1543_s25 + $0x58] sm:$0xff]  ;;  %v348_v20 = vld [vmem:[%s1543_s25 + $0x60] sm:$0xff]  ;;  %vm429_vm0 = vcmp.lt.s32.totalorder %v428_v29, 8  ;;  %s1148_s18 = scalar_lea.vmem %s1592_s23, 256  ;;  %p1719_p9 = scmp.ne.s32.totalorder %s1707_s15, 0 }
  0x8a   : > { %898 = vmatprep.subr.bf16.mxu0 %v897_v5  ;;  %855 = vmatprep.mubr.f32.mxu0 %v334_v9  ;;  %v913_v19 = vpack.c.bf16 %v347_v18, %v346_v17  ;;  %v349_v21 = vld [vmem:[%s1543_s25 + $0x68] sm:$0xff]  ;;  %v350_v23 = vld [vmem:[%s1543_s25 + $0x70] sm:$0xff]  ;;  %v351_v24 = vld [vmem:[%s1543_s25 + $0x78] sm:$0xff]  ;;  %v430_v32 = vsel %vm429_vm0, -1000000.0, %v1276_v31  ;;  %p1149_p3 = scmp.ne.s32.totalorder %s1592_s23, %s1148_s18  ;;  %s1277_s27 = smov [#allocation11]  }
  0x8b   : > { %v917_v22 = vpack.c.bf16 %v349_v21, %v348_v20  ;;  %v921_v25 = vpack.c.bf16 %v351_v24, %v350_v23  ;;  %v333_v26 = vld [vmem:[%s271_s17 + $0x8] sm:$0xff]  ;;  %v432_v30 = vstv %s431_s8  ;;  %v458_v37 = vld [vmem:[%s1572_s14] sm:$0xff]  ;;  %v460_v39 = vld [vmem:[%s1572_s14 + $0x10] sm:$0xff]  ;;  %s1152_s26 = sshll.u32 %s1277_s27, 4  ;;  %s1153_s26 = int_to_ptr.vmem [resolvable:$false] %s1152_s26 }
  0x8c   : > { %v335_v27 = vmul.f32 0.17677669, %v333_v26  ;;  %vm433_vm1 = vcmp.lt.s32.totalorder %v428_v29, %v432_v30  ;;  %v459_v38 = vld [vmem:[%s1572_s14 + $0x8] sm:$0xff]  ;;  %v461_v41 = vld [vmem:[%s1572_s14 + $0x18] sm:$0xff]  ;;  %v462_v43 = vld [vmem:[%s1572_s14 + $0x20] sm:$0xff]  ;;  %p1150_p11 = pnand %p1149_p3, %p1719_p9  ;;  %s1154_s20 = scalar_lea.vmem %s1153_s26, 512 }
  0x8d   : > { %v925_v40 = vpack.c.bf16 %v459_v38, %v458_v37  ;;  %v929_v42 = vpack.c.bf16 %v461_v41, %v460_v39  ;;  %v463_v44 = vld [vmem:[%s1572_s14 + $0x28] sm:$0xff]  ;;  %v464_v46 = vld [vmem:[%s1572_s14 + $0x30] sm:$0xff]  ;;  %v465_v47 = vld [vmem:[%s1572_s14 + $0x38] sm:$0xff]  ;;  %p1155_p1 = scmp.lt.s32.totalorder %s1592_s23, %s1153_s26  ;;  %p1156_p7 = scmp.lt.s32.totalorder %s1154_s20, %s1148_s18 }
  0x8e   : > { %v933_v45 = vpack.c.bf16 %v463_v44, %v462_v43  ;;  %v937_v48 = vpack.c.bf16 %v465_v47, %v464_v46  ;;  %v466_v57 = vld [vmem:[%s1572_s14 + $0x40] sm:$0xff]  ;;  %v467_v58 = vld [vmem:[%s1572_s14 + $0x48] sm:$0xff]  ;;  %v468_v60 = vld [vmem:[%s1572_s14 + $0x50] sm:$0xff]  ;;  %p1151_p12 = pneg %p1150_p11 }
  0x8f   : > { %926 = vmatprep.subr.bf16.mxu1 %v925_v40  ;;  %v941_v59 = vpack.c.bf16 %v467_v58, %v466_v57  ;;  %v469_v61 = vld [vmem:[%s1572_s14 + $0x58] sm:$0xff]  ;;  %v470_v63 = vld [vmem:[%s1572_s14 + $0x60] sm:$0xff]  ;;  %v471_v0 = vld [vmem:[%s1572_s14 + $0x68] sm:$0xff]  ;;  %p1157_p13 = por %p1156_p7, %p1155_p1 }
  0x90   : > { %928 = vmatpush3.bf16.msra.mxu1 %v925_v40  ;;  %v945_v62 = vpack.c.bf16 %v469_v61, %v468_v60  ;;  %v472_v1 = vld [vmem:[%s1572_s14 + $0x70] sm:$0xff]  ;;  %v949_v2 = vpack.c.bf16 %v471_v0, %v470_v63  ;;  %v473_v3 = vld [vmem:[%s1572_s14 + $0x78] sm:$0xff] }
  0x91   : > { %900 = vmatpush3.bf16.xpose.msra.mxu0 %v897_v5  ;;  %930 = vmatprep.subr.bf16.mxu1 %v929_v42  ;;  %v953_v4 = vpack.c.bf16 %v473_v3, %v472_v1  ;;  %p1158_p2 = pnand %p1157_p13, %p1151_p12 }
  0x92   : > { %902 = vmatprep.subr.bf16.mxu0 %v901_v10 }
  0x94   : > { %932 = vmatpush3.bf16.msra.mxu1 %v929_v42 }
  0x95   : > { %934 = vmatprep.subr.bf16.mxu1 %v933_v45 }
  0x98   : > { %936 = vmatpush3.bf16.msra.mxu1 %v933_v45 }
  0x99   : > { %904 = vmatpush3.bf16.xpose.msra.mxu0 %v901_v10  ;;  %938 = vmatprep.subr.bf16.mxu1 %v937_v48 }
  0x9a   : > { %906 = vmatprep.subr.bf16.mxu0 %v905_v13 }
  0x9c   : > { %940 = vmatpush3.bf16.msra.mxu1 %v937_v48 }
  0x9d   : > { %942 = vmatprep.subr.bf16.mxu1 %v941_v59 }
  0xa0   : > { %944 = vmatpush3.bf16.msra.mxu1 %v941_v59 }
  0xa1   : > { %908 = vmatpush3.bf16.xpose.msra.mxu0 %v905_v13  ;;  %946 = vmatprep.subr.bf16.mxu1 %v945_v62 }
  0xa2   : > { %910 = vmatprep.subr.bf16.mxu0 %v909_v16 }
  0xa4   : > { %948 = vmatpush3.bf16.msra.mxu1 %v945_v62 }
  0xa5   : > { %950 = vmatprep.subr.bf16.mxu1 %v949_v2 }
  0xa8   : > { %952 = vmatpush3.bf16.msra.mxu1 %v949_v2 }
  0xa9   : > { %912 = vmatpush3.bf16.xpose.msra.mxu0 %v909_v16  ;;  %954 = vmatprep.subr.bf16.mxu1 %v953_v4 }
  0xaa   : > { %914 = vmatprep.subr.bf16.mxu0 %v913_v19 }
  0xac   : > { %956 = vmatpush3.bf16.msra.mxu1 %v953_v4 }
  0xb1   : > { %916 = vmatpush3.bf16.xpose.msra.mxu0 %v913_v19 }
  0xb2   : > { %918 = vmatprep.subr.bf16.mxu0 %v917_v22 }
  0xb9   : > { %920 = vmatpush3.bf16.xpose.msra.mxu0 %v917_v22 }
  0xba   : > { %922 = vmatprep.subr.bf16.mxu0 %v921_v25 }
  0xc1   : > { %924 = vmatpush3.bf16.xpose.msra.mxu0 %v921_v25 }
  0xc8   : > { %856 = vmatmul.mubr.f32.vlgmr.msra.gmra.mrb[0].mxu0 %v335_v27 }
 0x19b   : > { %v857_v33 = vpop.f32.mrb[0].mxu0 }
 0x19c   : > { %v418_v34 = vpop.f32.mrb[1].mxu0  ;;  %v437_v36 = vsel %vm433_vm1, %v857_v33, %v430_v32 }
 0x19d   : > { %v436_v35 = vsel %vm433_vm1, %v418_v34, %v430_v32 }
 0x19e   : > { %438 = vmax.xlane.f32.xlu0 %v436_v35 }
 0x1a2   : > { %440 = vmax.xlane.f32.xlu0 %v437_v36 }
 0x22b   : > { %v439_v49 = vpop.xlane.xlu0 %438 }
 0x22c   : > { %v442_v50 = vsub.f32 %v436_v35, %v439_v49 }
 0x22e   : > { %v444_v51 = vmul.f32 1.442695, %v442_v50 }
 0x22f   : > { %v441_v52 = vpop.xlane.xlu0 %440 }
 0x230   : > { %1040 = vpow2.f32 %v444_v51  ;;  %v443_v53 = vsub.f32 %v437_v36, %v441_v52 }
 0x232   : > { %v446_v54 = vmul.f32 1.442695, %v443_v53 }
 0x234   : > { %1042 = vpow2.f32 %v446_v54 }
 0x23a   : > { %v1041_v55 = vpop.eup %1040 }
 0x23b   : > { %448 = vadd.xlane.f32.xlu1 %v1041_v55 }
 0x23e   : > { %v1043_v56 = vpop.eup %1042 }
 0x23f   : > { %450 = vadd.xlane.f32.xlu1 %v1043_v56 }
 0x2c8   : > { %v449_v5 = vpop.xlane.xlu1 %448 }
 0x2c9   : > { %1044 = vrcp.f32 %v449_v5 }
 0x2cc   : > { %v451_v6 = vpop.xlane.xlu1 %450 }
 0x2cd   : > { %1046 = vrcp.f32 %v451_v6 }
 0x2d3   : > { %v1045_v7 = vpop.eup %1044 }
 0x2d4   : > { %v453_v8 = vmul.f32 %v1045_v7, %v1041_v55 }
 0x2d6   : > { %456 = vst [vmem:[%s328_s13] sm:$0xff] %v453_v8  ;;  %890 = vmatprep.mubr.f32.mxu1 %v453_v8 }
 0x2d7   : > { %v1047_v9 = vpop.eup %1046 }
 0x2d8   : > { %v455_v10 = vmul.f32 %v1047_v9, %v1043_v56 }
 0x2da   : > { %457 = vst [vmem:[%s328_s13 + $0x8] sm:$0xff] %v455_v10  ;;  %891 = vmatmul.mubr.f32.vlgmr.msra.gmra.mrb[0].mxu1 %v455_v10 }
 0x2db   : > { %1161 = shalt.err (!%p1158_p2)
}
 0x2dc   : > { %s1162_s19 = scalar_lea.hbm %s1599_s22, 256  ;;  %s1166_s10 = scalar_lea.hbm %s1693_s5, 512 }
 0x2dd   : > { %p1163_p10 = scmp.ne.s32.totalorder %s1599_s22, %s1162_s19  ;;  %p1167_p8 = scmp.lt.u32.totalorder %s1599_s22, %s1693_s5 }
 0x2de   : > { %p1168_p5 = scmp.lt.u32.totalorder %s1166_s10, %s1162_s19  ;;  %p1170_p3 = scmp.lt.u32.totalorder %s1162_s19, %s1599_s22 }
 0x2df   : > { %p1164_p0 = pnand %p1163_p10, %p1719_p9 }
 0x2e0   : > { %p1169_p4 = por %p1168_p5, %p1167_p8 }
 0x2e1   : > { %p1165_p6 = pneg %p1164_p0 }
 0x2e2   : > { %p1171_p11 = por %p1170_p3, %p1169_p4 }
 0x2e4   : > { %p1172_p12 = pnand %p1171_p11, %p1165_p6 }
 0x2e6   : > { %1175 = shalt.err (!%p1172_p12)
}
 0x2e7   : > { %s1278_s8 = smov 128   ;;  %s1279_s14 = smov 8  }
 0x2e8   : > { %964 = dma.vmem_to_hbm [thread:$0]  (%p1719_p9), %s1592_s23, 256, %s1599_s22, %s557_s21, %s1278_s8, %s1278_s8, %s1279_s14  }
 0x2e9   : > { %s321_s13 = scalar_lea.vmem [#allocation10], %s1531_s11  ;;  %s1636_s27 = scalar_lea.hbm %s1692_s4, %s785_s30 }
 0x2ea   : > { %s572_s24 = sshll.u32 %s321_s13, 4  ;;  %s552_s26 = scalar_lea.sflag [#allocation6], %s1528_s12  ;;  %s1629_s24 = int_to_ptr.vmem [resolvable:$true] %s572_s24 }
 0x2eb   : > { %s1176_s20 = scalar_lea.vmem %s1629_s24, 256  ;;  %s1280_s11 = smov [#allocation10]  }
 0x2ec   : > { %p1177_p1 = scmp.ne.s32.totalorder %s1629_s24, %s1176_s20  ;;  %s1180_s23 = sshll.u32 %s1280_s11, 4  ;;  %s1181_s23 = int_to_ptr.vmem [resolvable:$false] %s1180_s23 }
 0x2ed   : > { %s1182_s22 = scalar_lea.vmem %s1181_s23, 512  ;;  %p1183_p2 = scmp.lt.s32.totalorder %s1629_s24, %s1181_s23 }
 0x2ee   : > { %p1178_p7 = pnand %p1177_p1, %p1719_p9  ;;  %p1184_p10 = scmp.lt.s32.totalorder %s1182_s22, %s1176_s20 }
 0x2f0   : > { %p1179_p13 = pneg %p1178_p7  ;;  %p1185_p0 = por %p1184_p10, %p1183_p2 }
 0x2f2   : > { %p1186_p6 = pnand %p1185_p0, %p1179_p13 }
 0x3ad   : > { %v892_v11 = vpop.f32.mrb[0].mxu1 }
 0x3ae   : > { %550 = vst [vmem:[%s321_s13 + $0x8] sm:$0xff] %v892_v11  ;;  %v540_v12 = vpop.f32.mrb[1].mxu1 }
 0x3af   : > { %549 = vst [vmem:[%s321_s13] sm:$0xff] %v540_v12 }
 0x3b0   : > { %1189 = shalt.err (!%p1186_p6)
}
 0x3b1   : > { %s1190_s6 = scalar_lea.hbm %s1636_s27, 256  ;;  %s1194_s19 = scalar_lea.hbm %s1692_s4, 512 }
 0x3b2   : > { %p1191_p8 = scmp.ne.s32.totalorder %s1636_s27, %s1190_s6  ;;  %p1195_p3 = scmp.lt.u32.totalorder %s1636_s27, %s1692_s4 }
 0x3b3   : > { %p1196_p11 = scmp.lt.u32.totalorder %s1194_s19, %s1190_s6  ;;  %p1198_p1 = scmp.lt.u32.totalorder %s1190_s6, %s1636_s27 }
 0x3b4   : > { %p1192_p5 = pnand %p1191_p8, %p1719_p9 }
 0x3b5   : > { %p1197_p12 = por %p1196_p11, %p1195_p3 }
 0x3b6   : > { %p1193_p4 = pneg %p1192_p5 }
 0x3b7   : > { %p1199_p7 = por %p1198_p1, %p1197_p12 }
 0x3b9   : > { %p1200_p13 = pnand %p1199_p7, %p1193_p4 }
 0x3bb   : > { %1203 = shalt.err (!%p1200_p13)
}
 0x3bc   : > { %963 = dma.vmem_to_hbm [thread:$0]  (%p1719_p9), %s1629_s24, 256, %s1636_s27, %s552_s26, %s1278_s8, %s1278_s8, %s1279_s14  }
 0x3bd PF: > { %s1720_s10 = sld [smem:[#allocation21_spill]]  ;;  %s605_s9 = sand.u32 1, %s1248_s28  }
 0x3be   : > { %p1722_p10 = scmp.ge.s32.totalorder %s1268_s7, 2  ;;  %s606_s25 = scalar_lea.sflag [#allocation6], %s605_s9 }
 0x3c3   : > { %p1721_p2 = scmp.ne.s32.totalorder %s1720_s10, 0 }
 0x3c5   : > { %p978_p0 = pnand %p1722_p10, %p1721_p2 }
 0x3c7   : > { %1239 = dma.done.wait (!%p978_p0), %s606_s25, 256  }
 0x3c8   : > { %1241 = vsyncadd (!%p978_p0), %s606_s25, 4294967040  ;;  %s615_s15 = scalar_lea.sflag [#allocation12], %s605_s9 }
 0x3c9   : > { %1243 = dma.done.wait (!%p978_p0), %s615_s15, 256  }
 0x3ca   : > { %1245 = vsyncadd (!%p978_p0), %s615_s15, 4294967040  ;;  %s32_s7 = sadd.s32 1, %s1268_s7   ;;  %s1723_s12 = sld [smem:[#allocation18_spill]] }
 0x3cb   : > { %p29_p6 = scmp.ge.s32.totalorder %s32_s7, 4   ;;  %s1724_s30 = sld [smem:[#allocation20_spill]] }
 0x3cc   : > { %s1725_s8 = sld [smem:[#allocation19_spill]]  ;;  %s1726_s28 = smov %s1252_s29 }
 0x3cd   : > { %s1728_s6 = smov %s1264_s0  ;;  %31 = sbr.rel (!%p29_p6) target bundleno = 22 (0x16), region = 118 }
 0x3d0   : > { %s1727_s29 = smov %s1723_s12 }
 0x3d2   : > { %s1729_s0 = smov %s1725_s8 }
 0x3d4   :  { %620 = vsyncpa [#allocation5], 1 }
 0x3d5   :  { %622 = vsyncpa [#allocation5 + $0x1], 1 }
 0x3d6   :  { %623 = vsyncpa [#allocation8], 1 }
 0x3d7   :  { %625 = vsyncpa [#allocation8 + $0x1], 1 }
 0x3d8   :  { %626 = vsyncpa [#allocation6], 1 }
 0x3d9   :  { %628 = vsyncpa [#allocation6 + $0x1], 1 }
 0x3da   :  { %629 = vsyncpa [#allocation12], 1 }
 0x3db   :  { %631 = vsyncpa [#allocation12 + $0x1], 1 }

</bundles_post_ra>
